<compile_context>
chip_gen: v7x
topology: tpu7x:2x2x1
jax: 0.10.0
libtpu: 0.0.40
codegen_flags: <defaults>
</compile_context>

<pallas_src>
import math
from functools import partial

import jax
import jax.numpy as jnp
from jax.experimental import pallas as pl
from jax.experimental.pallas import tpu as pltpu  # noqa: F401  (not needed at this tiny size)


def _mm_broadcast_add_kernel(x1_ref, x2_ref, inp_ref, out_ref):
    """x1_ref: (M, K), x2_ref: (K, N), inp_ref / out_ref: (L, M, N).

    Computes v1 = x1 @ x2 on the VPU (K unrolled outer products; K is tiny)
    and writes out = inp + v1 broadcast over the leading L axis.
    """
    x1 = x1_ref[...].astype(jnp.float32)   # (M, K)
    x2 = x2_ref[...].astype(jnp.float32)   # (K, N)
    k_dim = x1.shape[1]

    # Tiny matmul as a sum of outer products -> pure VPU work (no MXU padding).
    v1 = x1[:, 0:1] * x2[0:1, :]           # (M, N)
    for k in range(1, k_dim):
        v1 = v1 + x1[:, k:k + 1] * x2[k:k + 1, :]

    # Broadcast-add over the leading (non-tiled) axis; cast on the VMEM tile.
    out_ref[...] = (inp_ref[...].astype(jnp.float32) + v1[None, :, :]).astype(out_ref.dtype)


@partial(jax.jit, donate_argnums=(2,))  # donate inp so the in-place alias reaches the caller's buffer
def mm_broadcast_add(x1, x2, inp):
    M, K = x1.shape
    K2, N = x2.shape
    assert K == K2, "inner dims must match"
    assert inp.shape[-2:] == (M, N), "inp trailing dims must match mm result"

    lead = inp.shape[:-2]
    L = math.prod(lead) if lead else 1

    out_dtype = jnp.result_type(x1.dtype, x2.dtype, inp.dtype)

    # Free contiguous reshape (no transpose): natural (L, M, N) layout.
    inp3 = inp.reshape(L, M, N)

    # Alias inp -> out only when dtypes match (pallas requires exact match).
    aliases = {2: 0} if inp.dtype == out_dtype else {}

    out3 = pl.pallas_call(
        _mm_broadcast_add_kernel,
        out_shape=jax.ShapeDtypeStruct((L, M, N), out_dtype),
        # No grid / BlockSpecs: full arrays land in VMEM as single blocks
        # (~25 KB total -> one DMA in, a handful of vector ops, one DMA out).
        input_output_aliases=aliases,
    )(x1, x2, inp3)

    return out3.reshape(*lead, M, N)


if __name__ == "__main__":
    key = jax.random.PRNGKey(0)
    k1, k2, k3 = jax.random.split(key, 3)

    # Shapes implied by the forward pass (consistent variant of the original).
    x1 = jax.random.normal(k1, (5, 2), dtype=jnp.float32)
    x2 = jax.random.normal(k2, (2, 7), dtype=jnp.float32)
    inp = jax.random.normal(k3, (5, 5, 7, 5, 7), dtype=jnp.float32)

    # Plain-JAX reference (also the performance bar: one fused XLA op).
    # Computed BEFORE the kernel call because `inp` is donated to the kernel.
    ref = jax.block_until_ready(jnp.dot(x1, x2) + inp)

    out = mm_broadcast_add(x1, x2, inp)   # donates inp's buffer (written in place)
    out = jax.block_until_ready(out)

    assert out.shape == (5, 5, 7, 5, 7)
    assert jnp.allclose(out, ref, atol=1e-5, rtol=1e-5), "mismatch vs reference"

    print("KERNEL_OK")
</pallas_src>

<mosaic_0001>
module attributes {stable_mosaic.version = 11 : i64} {
  func.func @_mm_broadcast_add_kernel(%arg0: memref<5x2xf32, #tpu.memory_space<vmem>>, %arg1: memref<2x7xf32, #tpu.memory_space<vmem>>, %arg2: memref<175x5x7xf32, #tpu.memory_space<vmem>>, %arg3: memref<175x5x7xf32, #tpu.memory_space<vmem>>) attributes {dimension_semantics = [], scalar_prefetch = 0 : i64, scratch_operands = 0 : i64, tpu.core_type = #tpu.core_type<tc>} {
    %c0 = arith.constant 0 : index
    %c0_0 = arith.constant 0 : index
    %0 = vector.load %arg0[%c0, %c0_0] : memref<5x2xf32, #tpu.memory_space<vmem>>, vector<5x2xf32>
    %c0_1 = arith.constant 0 : index
    %c0_2 = arith.constant 0 : index
    %1 = vector.load %arg1[%c0_1, %c0_2] : memref<2x7xf32, #tpu.memory_space<vmem>>, vector<2x7xf32>
    %2 = vector.extract_strided_slice %0 {offsets = [0, 0], sizes = [5, 1], strides = [1, 1]} : vector<5x2xf32> to vector<5x1xf32>
    %3 = vector.extract_strided_slice %1 {offsets = [0, 0], sizes = [1, 7], strides = [1, 1]} : vector<2x7xf32> to vector<1x7xf32>
    %4 = vector.broadcast %2 : vector<5x1xf32> to vector<5x7xf32>
    %5 = vector.broadcast %3 : vector<1x7xf32> to vector<5x7xf32>
    %6 = arith.mulf %4, %5 : vector<5x7xf32>
    %7 = vector.extract_strided_slice %0 {offsets = [0, 1], sizes = [5, 1], strides = [1, 1]} : vector<5x2xf32> to vector<5x1xf32>
    %8 = vector.extract_strided_slice %1 {offsets = [1, 0], sizes = [1, 7], strides = [1, 1]} : vector<2x7xf32> to vector<1x7xf32>
    %9 = vector.broadcast %7 : vector<5x1xf32> to vector<5x7xf32>
    %10 = vector.broadcast %8 : vector<1x7xf32> to vector<5x7xf32>
    %11 = arith.mulf %9, %10 : vector<5x7xf32>
    %12 = arith.addf %6, %11 : vector<5x7xf32>
    %c0_3 = arith.constant 0 : index
    %c0_4 = arith.constant 0 : index
    %c0_5 = arith.constant 0 : index
    %13 = vector.load %arg2[%c0_3, %c0_4, %c0_5] : memref<175x5x7xf32, #tpu.memory_space<vmem>>, vector<175x5x7xf32>
    %14 = vector.shape_cast %12 : vector<5x7xf32> to vector<1x5x7xf32>
    %15 = vector.broadcast %14 : vector<1x5x7xf32> to vector<175x5x7xf32>
    %16 = arith.addf %13, %15 : vector<175x5x7xf32>
    %c0_6 = arith.constant 0 : index
    %c0_7 = arith.constant 0 : index
    %c0_8 = arith.constant 0 : index
    %17 = vector.load %arg3[%c0_6, %c0_7, %c0_8] : memref<175x5x7xf32, #tpu.memory_space<vmem>>, vector<175x5x7xf32>
    tpu.vector_store %arg3[%c0_6, %c0_7, %c0_8], %16 {strides = array<i32>} : memref<175x5x7xf32, #tpu.memory_space<vmem>>, vector<175x5x7xf32>,
    return
  }
}

</mosaic_0001>

<bundles_post_ra>
// kernel: mm_broadcast_add.1
= control target key start
LH: loop header
LB: loop body
LE: loop exit
PB: predicated region body
PF: predicated region fallthrough
CT: control target
= control target key end

     0   :  { %v570_v0 = vmov 0   ;;  %v571_v2 = vmov 1   ;;  %v21_v3 = vlaneseq  ;;  %vm386_vm0 = vcmask 53248   ;;  %s2312_s0 = inlined_call_operand.vmem [shape: f32[5,2], index: 0, kind: input, shape index: {}]   ;;  %s2313_s1 = inlined_call_operand.vmem [shape: f32[2,7], index: 1, kind: input, shape index: {}]   ;;  %s2314_s2 = inlined_call_operand.vmem [shape: f32[175,5,7], index: 2, kind: input, shape index: {}, may-alias: {2,3}]   ;;  %s2315_s3 = inlined_call_operand.vmem [shape: f32[175,5,7], index: 3, kind: output, shape index: {}, may-alias: {2,3}]  }
   0x1   :  { %568 = vset.pattern.permute.xlu0 %v570_v0  ;;  %v14_v1 = vld [vmem:[%s2312_s0] sm:$0x1f]  ;;  %v37_v13 = vld [vmem:[%s2314_s2 + $0x8] sm:$0x1f]  ;;  %v38_v14 = vld [vmem:[%s2314_s2 + $0x10] sm:$0x1f] }
   0x2   :  { %18 = vperm.xlu0 %568, %v14_v1   ;;  %v22_v4 = vshrl.u32 %v21_v3, 7  ;;  %v15_v7 = vld [vmem:[%s2313_s1] sm:$0x3]  ;;  %v39_v15 = vld [vmem:[%s2314_s2 + $0x18] sm:$0x1f] }
   0x3   :  { %v36_v12 = vld [vmem:[%s2314_s2] sm:$0x1f]  ;;  %v41_v19 = vld [vmem:[%s2314_s2 + $0x28] sm:$0x1f]  ;;  %v42_v20 = vld [vmem:[%s2314_s2 + $0x30] sm:$0x1f] }
   0x4   :  { %v23_v5 = vsub.s32 0, %v22_v4  ;;  %v32_v6 = vsub.s32 1, %v22_v4  ;;  %v40_v18 = vld [vmem:[%s2314_s2 + $0x20] sm:$0x1f]  ;;  %v43_v21 = vld [vmem:[%s2314_s2 + $0x38] sm:$0x1f] }
   0x5   :  { %v44_v22 = vld [vmem:[%s2314_s2 + $0x40] sm:$0x1f]  ;;  %v45_v23 = vld [vmem:[%s2314_s2 + $0x48] sm:$0x1f]  ;;  %v46_v24 = vld [vmem:[%s2314_s2 + $0x50] sm:$0x1f] }
   0x6   :  { %569 = vset.pattern.permute.xlu0 %v571_v2  ;;  %v24_v9 = vrot.slane %v15_v7, %v23_v5  ;;  %v33_v10 = vrot.slane %v15_v7, %v32_v6  ;;  %v47_v25 = vld [vmem:[%s2314_s2 + $0x58] sm:$0x1f]  ;;  %v48_v27 = vld [vmem:[%s2314_s2 + $0x60] sm:$0x1f]  ;;  %v49_v28 = vld [vmem:[%s2314_s2 + $0x68] sm:$0x1f] }
   0x7   :  { %27 = vperm.xlu0 %569, %v14_v1   ;;  %v50_v29 = vld [vmem:[%s2314_s2 + $0x70] sm:$0x1f]  ;;  %v51_v30 = vld [vmem:[%s2314_s2 + $0x78] sm:$0x1f]  ;;  %v52_v31 = vld [vmem:[%s2314_s2 + $0x80] sm:$0x1f] }
   0x8   :  { %v53_v32 = vld [vmem:[%s2314_s2 + $0x88] sm:$0x1f]  ;;  %v54_v33 = vld [vmem:[%s2314_s2 + $0x90] sm:$0x1f]  ;;  %v55_v34 = vld [vmem:[%s2314_s2 + $0x98] sm:$0x1f] }
   0x9   :  { %v56_v35 = vld [vmem:[%s2314_s2 + $0xa0] sm:$0x1f]  ;;  %v57_v36 = vld [vmem:[%s2314_s2 + $0xa8] sm:$0x1f]  ;;  %v58_v37 = vld [vmem:[%s2314_s2 + $0xb0] sm:$0x1f] }
   0xa   :  { %v59_v38 = vld [vmem:[%s2314_s2 + $0xb8] sm:$0x1f]  ;;  %v60_v43 = vld [vmem:[%s2314_s2 + $0xc0] sm:$0x1f]  ;;  %v61_v44 = vld [vmem:[%s2314_s2 + $0xc8] sm:$0x1f] }
   0xb   :  { %v62_v45 = vld [vmem:[%s2314_s2 + $0xd0] sm:$0x1f]  ;;  %v63_v46 = vld [vmem:[%s2314_s2 + $0xd8] sm:$0x1f]  ;;  %v695_v51 = vld [vmem:[%s2314_s2 + $0xe0] sm:$0x1f] }
   0xc   :  { %v700_v52 = vld [vmem:[%s2314_s2 + $0xe8] sm:$0x1f]  ;;  %v705_v53 = vld [vmem:[%s2314_s2 + $0xf0] sm:$0x1f]  ;;  %v710_v54 = vld [vmem:[%s2314_s2 + $0xf8] sm:$0x1f] }
  0x81   :  { %v19_v8 = vpop.permute.xlu0 %18 }
  0x82   :  { %v25_v16 = vmul.f32 %v24_v9, %v19_v8 }
  0x86   :  { %v28_v11 = vpop.permute.xlu0 %27 }
  0x87   :  { %v34_v17 = vmul.f32 %v33_v10, %v28_v11 }
  0x89   :  { %v634_v26 = vadd.f32 %v34_v17, %v25_v16 }
  0x8b   :  { %v211_v39 = vadd.f32 %v36_v12, %v634_v26  ;;  %v212_v40 = vadd.f32 %v37_v13, %v634_v26  ;;  %v213_v41 = vadd.f32 %v38_v14, %v634_v26  ;;  %v214_v42 = vadd.f32 %v39_v15, %v634_v26 }
  0x8c   :  { %v215_v47 = vadd.f32 %v40_v18, %v634_v26  ;;  %v216_v48 = vadd.f32 %v41_v19, %v634_v26  ;;  %v217_v49 = vadd.f32 %v42_v20, %v634_v26  ;;  %v218_v50 = vadd.f32 %v43_v21, %v634_v26 }
  0x8d   :  { %v219_v55 = vadd.f32 %v44_v22, %v634_v26  ;;  %v220_v56 = vadd.f32 %v45_v23, %v634_v26  ;;  %v221_v57 = vadd.f32 %v46_v24, %v634_v26  ;;  %v222_v58 = vadd.f32 %v47_v25, %v634_v26  ;;  %387 = vst.msk [vmem:[%s2315_s3] sm:$0x1f] %vm386_vm0, %v211_v39 }
  0x8e   :  { %388 = vst.msk [vmem:[%s2315_s3 + $0x8] sm:$0x1f] %vm386_vm0, %v212_v40  ;;  %389 = vst.msk [vmem:[%s2315_s3 + $0x10] sm:$0x1f] %vm386_vm0, %v213_v41  ;;  %v223_v63 = vadd.f32 %v48_v27, %v634_v26  ;;  %v224_v0 = vadd.f32 %v49_v28, %v634_v26  ;;  %v225_v1 = vadd.f32 %v50_v29, %v634_v26 }
  0x8f   :  { %390 = vst.msk [vmem:[%s2315_s3 + $0x18] sm:$0x1f] %vm386_vm0, %v214_v42  ;;  %v226_v2 = vadd.f32 %v51_v30, %v634_v26  ;;  %v227_v7 = vadd.f32 %v52_v31, %v634_v26  ;;  %v228_v8 = vadd.f32 %v53_v32, %v634_v26  ;;  %v229_v9 = vadd.f32 %v54_v33, %v634_v26 }
  0x90   :  { %v230_v10 = vadd.f32 %v55_v34, %v634_v26  ;;  %v231_v15 = vadd.f32 %v56_v35, %v634_v26  ;;  %v232_v16 = vadd.f32 %v57_v36, %v634_v26  ;;  %v233_v17 = vadd.f32 %v58_v37, %v634_v26 }
  0x91   :  { %v234_v18 = vadd.f32 %v59_v38, %v634_v26  ;;  %v235_v23 = vadd.f32 %v60_v43, %v634_v26  ;;  %v236_v24 = vadd.f32 %v61_v44, %v634_v26  ;;  %v237_v25 = vadd.f32 %v62_v45, %v634_v26 }
  0x92   :  { %v238_v27 = vadd.f32 %v63_v46, %v634_v26  ;;  %v239_v32 = vadd.f32 %v695_v51, %v634_v26  ;;  %v240_v33 = vadd.f32 %v700_v52, %v634_v26  ;;  %v241_v34 = vadd.f32 %v705_v53, %v634_v26 }
  0x93   :  { %v242_v35 = vadd.f32 %v710_v54, %v634_v26 }
  0x96   :  { %v735_v59 = vld [vmem:[%s2314_s2 + $0x100] sm:$0x1f]  ;;  %v740_v60 = vld [vmem:[%s2314_s2 + $0x108] sm:$0x1f]  ;;  %v745_v61 = vld [vmem:[%s2314_s2 + $0x110] sm:$0x1f] }
  0x97   :  { %v750_v62 = vld [vmem:[%s2314_s2 + $0x118] sm:$0x1f]  ;;  %v243_v40 = vadd.f32 %v735_v59, %v634_v26  ;;  %v244_v41 = vadd.f32 %v740_v60, %v634_v26  ;;  %v245_v42 = vadd.f32 %v745_v61, %v634_v26 }
  0x98   :  { %391 = vst.msk [vmem:[%s2315_s3 + $0x20] sm:$0x1f] %vm386_vm0, %v215_v47  ;;  %392 = vst.msk [vmem:[%s2315_s3 + $0x28] sm:$0x1f] %vm386_vm0, %v216_v48  ;;  %v246_v43 = vadd.f32 %v750_v62, %v634_v26 }
  0x99   :  { %393 = vst.msk [vmem:[%s2315_s3 + $0x30] sm:$0x1f] %vm386_vm0, %v217_v49  ;;  %394 = vst.msk [vmem:[%s2315_s3 + $0x38] sm:$0x1f] %vm386_vm0, %v218_v50 }
  0xa0   :  { %v775_v3 = vld [vmem:[%s2314_s2 + $0x120] sm:$0x1f]  ;;  %v780_v4 = vld [vmem:[%s2314_s2 + $0x128] sm:$0x1f]  ;;  %v785_v5 = vld [vmem:[%s2314_s2 + $0x130] sm:$0x1f] }
  0xa1   :  { %v790_v6 = vld [vmem:[%s2314_s2 + $0x138] sm:$0x1f]  ;;  %v247_v48 = vadd.f32 %v775_v3, %v634_v26  ;;  %v248_v49 = vadd.f32 %v780_v4, %v634_v26  ;;  %v249_v50 = vadd.f32 %v785_v5, %v634_v26 }
  0xa2   :  { %395 = vst.msk [vmem:[%s2315_s3 + $0x40] sm:$0x1f] %vm386_vm0, %v219_v55  ;;  %396 = vst.msk [vmem:[%s2315_s3 + $0x48] sm:$0x1f] %vm386_vm0, %v220_v56  ;;  %v250_v51 = vadd.f32 %v790_v6, %v634_v26 }
  0xa3   :  { %397 = vst.msk [vmem:[%s2315_s3 + $0x50] sm:$0x1f] %vm386_vm0, %v221_v57  ;;  %398 = vst.msk [vmem:[%s2315_s3 + $0x58] sm:$0x1f] %vm386_vm0, %v222_v58 }
  0xaa   :  { %v815_v11 = vld [vmem:[%s2314_s2 + $0x140] sm:$0x1f]  ;;  %v820_v12 = vld [vmem:[%s2314_s2 + $0x148] sm:$0x1f]  ;;  %v825_v13 = vld [vmem:[%s2314_s2 + $0x150] sm:$0x1f] }
  0xab   :  { %v830_v14 = vld [vmem:[%s2314_s2 + $0x158] sm:$0x1f]  ;;  %v251_v56 = vadd.f32 %v815_v11, %v634_v26  ;;  %v252_v57 = vadd.f32 %v820_v12, %v634_v26  ;;  %v253_v58 = vadd.f32 %v825_v13, %v634_v26 }
  0xac   :  { %399 = vst.msk [vmem:[%s2315_s3 + $0x60] sm:$0x1f] %vm386_vm0, %v223_v63  ;;  %400 = vst.msk [vmem:[%s2315_s3 + $0x68] sm:$0x1f] %vm386_vm0, %v224_v0  ;;  %v254_v59 = vadd.f32 %v830_v14, %v634_v26 }
  0xad   :  { %401 = vst.msk [vmem:[%s2315_s3 + $0x70] sm:$0x1f] %vm386_vm0, %v225_v1  ;;  %402 = vst.msk [vmem:[%s2315_s3 + $0x78] sm:$0x1f] %vm386_vm0, %v226_v2 }
  0xb4   :  { %v855_v19 = vld [vmem:[%s2314_s2 + $0x160] sm:$0x1f]  ;;  %v860_v20 = vld [vmem:[%s2314_s2 + $0x168] sm:$0x1f]  ;;  %v865_v21 = vld [vmem:[%s2314_s2 + $0x170] sm:$0x1f] }
  0xb5   :  { %v870_v22 = vld [vmem:[%s2314_s2 + $0x178] sm:$0x1f]  ;;  %v255_v0 = vadd.f32 %v855_v19, %v634_v26  ;;  %v256_v1 = vadd.f32 %v860_v20, %v634_v26  ;;  %v257_v2 = vadd.f32 %v865_v21, %v634_v26 }
  0xb6   :  { %403 = vst.msk [vmem:[%s2315_s3 + $0x80] sm:$0x1f] %vm386_vm0, %v227_v7  ;;  %404 = vst.msk [vmem:[%s2315_s3 + $0x88] sm:$0x1f] %vm386_vm0, %v228_v8  ;;  %v258_v3 = vadd.f32 %v870_v22, %v634_v26 }
  0xb7   :  { %405 = vst.msk [vmem:[%s2315_s3 + $0x90] sm:$0x1f] %vm386_vm0, %v229_v9  ;;  %406 = vst.msk [vmem:[%s2315_s3 + $0x98] sm:$0x1f] %vm386_vm0, %v230_v10 }
  0xbe   :  { %v895_v28 = vld [vmem:[%s2314_s2 + $0x180] sm:$0x1f]  ;;  %v900_v29 = vld [vmem:[%s2314_s2 + $0x188] sm:$0x1f]  ;;  %v905_v30 = vld [vmem:[%s2314_s2 + $0x190] sm:$0x1f] }
  0xbf   :  { %v910_v31 = vld [vmem:[%s2314_s2 + $0x198] sm:$0x1f]  ;;  %v259_v8 = vadd.f32 %v895_v28, %v634_v26  ;;  %v260_v9 = vadd.f32 %v900_v29, %v634_v26  ;;  %v261_v10 = vadd.f32 %v905_v30, %v634_v26 }
  0xc0   :  { %407 = vst.msk [vmem:[%s2315_s3 + $0xa0] sm:$0x1f] %vm386_vm0, %v231_v15  ;;  %408 = vst.msk [vmem:[%s2315_s3 + $0xa8] sm:$0x1f] %vm386_vm0, %v232_v16  ;;  %v262_v11 = vadd.f32 %v910_v31, %v634_v26 }
  0xc1   :  { %409 = vst.msk [vmem:[%s2315_s3 + $0xb0] sm:$0x1f] %vm386_vm0, %v233_v17  ;;  %410 = vst.msk [vmem:[%s2315_s3 + $0xb8] sm:$0x1f] %vm386_vm0, %v234_v18 }
  0xc8   :  { %v939_v36 = vld [vmem:[%s2314_s2 + $0x1a0] sm:$0x1f]  ;;  %v944_v37 = vld [vmem:[%s2314_s2 + $0x1a8] sm:$0x1f]  ;;  %v949_v38 = vld [vmem:[%s2314_s2 + $0x1b0] sm:$0x1f] }
  0xc9   :  { %v954_v39 = vld [vmem:[%s2314_s2 + $0x1b8] sm:$0x1f]  ;;  %v263_v16 = vadd.f32 %v939_v36, %v634_v26  ;;  %v264_v17 = vadd.f32 %v944_v37, %v634_v26  ;;  %v265_v18 = vadd.f32 %v949_v38, %v634_v26 }
  0xca   :  { %411 = vst.msk [vmem:[%s2315_s3 + $0xc0] sm:$0x1f] %vm386_vm0, %v235_v23  ;;  %412 = vst.msk [vmem:[%s2315_s3 + $0xc8] sm:$0x1f] %vm386_vm0, %v236_v24  ;;  %v266_v19 = vadd.f32 %v954_v39, %v634_v26 }
  0xcb   :  { %413 = vst.msk [vmem:[%s2315_s3 + $0xd0] sm:$0x1f] %vm386_vm0, %v237_v25  ;;  %414 = vst.msk [vmem:[%s2315_s3 + $0xd8] sm:$0x1f] %vm386_vm0, %v238_v27 }
  0xd2   :  { %v983_v44 = vld [vmem:[%s2314_s2 + $0x1c0] sm:$0x1f]  ;;  %v988_v45 = vld [vmem:[%s2314_s2 + $0x1c8] sm:$0x1f]  ;;  %v993_v46 = vld [vmem:[%s2314_s2 + $0x1d0] sm:$0x1f] }
  0xd3   :  { %v998_v47 = vld [vmem:[%s2314_s2 + $0x1d8] sm:$0x1f]  ;;  %v267_v24 = vadd.f32 %v983_v44, %v634_v26  ;;  %v268_v25 = vadd.f32 %v988_v45, %v634_v26  ;;  %v269_v27 = vadd.f32 %v993_v46, %v634_v26 }
  0xd4   :  { %415 = vst.msk [vmem:[%s2315_s3 + $0xe0] sm:$0x1f] %vm386_vm0, %v239_v32  ;;  %416 = vst.msk [vmem:[%s2315_s3 + $0xe8] sm:$0x1f] %vm386_vm0, %v240_v33  ;;  %v270_v28 = vadd.f32 %v998_v47, %v634_v26 }
  0xd5   :  { %417 = vst.msk [vmem:[%s2315_s3 + $0xf0] sm:$0x1f] %vm386_vm0, %v241_v34  ;;  %418 = vst.msk [vmem:[%s2315_s3 + $0xf8] sm:$0x1f] %vm386_vm0, %v242_v35 }
  0xdc   :  { %v1027_v52 = vld [vmem:[%s2314_s2 + $0x1e0] sm:$0x1f]  ;;  %v1032_v53 = vld [vmem:[%s2314_s2 + $0x1e8] sm:$0x1f]  ;;  %v1037_v54 = vld [vmem:[%s2314_s2 + $0x1f0] sm:$0x1f] }
  0xdd   :  { %v1042_v55 = vld [vmem:[%s2314_s2 + $0x1f8] sm:$0x1f]  ;;  %v271_v33 = vadd.f32 %v1027_v52, %v634_v26  ;;  %v272_v34 = vadd.f32 %v1032_v53, %v634_v26  ;;  %v273_v35 = vadd.f32 %v1037_v54, %v634_v26 }
  0xde   :  { %419 = vst.msk [vmem:[%s2315_s3 + $0x100] sm:$0x1f] %vm386_vm0, %v243_v40  ;;  %420 = vst.msk [vmem:[%s2315_s3 + $0x108] sm:$0x1f] %vm386_vm0, %v244_v41  ;;  %v274_v36 = vadd.f32 %v1042_v55, %v634_v26 }
  0xdf   :  { %421 = vst.msk [vmem:[%s2315_s3 + $0x110] sm:$0x1f] %vm386_vm0, %v245_v42  ;;  %422 = vst.msk [vmem:[%s2315_s3 + $0x118] sm:$0x1f] %vm386_vm0, %v246_v43 }
  0xe6   :  { %v1071_v60 = vld [vmem:[%s2314_s2 + $0x200] sm:$0x1f]  ;;  %v1076_v61 = vld [vmem:[%s2314_s2 + $0x208] sm:$0x1f]  ;;  %v1081_v62 = vld [vmem:[%s2314_s2 + $0x210] sm:$0x1f] }
  0xe7   :  { %v1086_v63 = vld [vmem:[%s2314_s2 + $0x218] sm:$0x1f]  ;;  %v275_v41 = vadd.f32 %v1071_v60, %v634_v26  ;;  %v276_v42 = vadd.f32 %v1076_v61, %v634_v26  ;;  %v277_v43 = vadd.f32 %v1081_v62, %v634_v26 }
  0xe8   :  { %423 = vst.msk [vmem:[%s2315_s3 + $0x120] sm:$0x1f] %vm386_vm0, %v247_v48  ;;  %424 = vst.msk [vmem:[%s2315_s3 + $0x128] sm:$0x1f] %vm386_vm0, %v248_v49  ;;  %v278_v44 = vadd.f32 %v1086_v63, %v634_v26 }
  0xe9   :  { %425 = vst.msk [vmem:[%s2315_s3 + $0x130] sm:$0x1f] %vm386_vm0, %v249_v50  ;;  %426 = vst.msk [vmem:[%s2315_s3 + $0x138] sm:$0x1f] %vm386_vm0, %v250_v51 }
  0xf0   :  { %v1115_v4 = vld [vmem:[%s2314_s2 + $0x220] sm:$0x1f]  ;;  %v1120_v5 = vld [vmem:[%s2314_s2 + $0x228] sm:$0x1f]  ;;  %v1125_v6 = vld [vmem:[%s2314_s2 + $0x230] sm:$0x1f] }
  0xf1   :  { %v1130_v7 = vld [vmem:[%s2314_s2 + $0x238] sm:$0x1f]  ;;  %v279_v49 = vadd.f32 %v1115_v4, %v634_v26  ;;  %v280_v50 = vadd.f32 %v1120_v5, %v634_v26  ;;  %v281_v51 = vadd.f32 %v1125_v6, %v634_v26 }
  0xf2   :  { %427 = vst.msk [vmem:[%s2315_s3 + $0x140] sm:$0x1f] %vm386_vm0, %v251_v56  ;;  %428 = vst.msk [vmem:[%s2315_s3 + $0x148] sm:$0x1f] %vm386_vm0, %v252_v57  ;;  %v282_v52 = vadd.f32 %v1130_v7, %v634_v26 }
  0xf3   :  { %429 = vst.msk [vmem:[%s2315_s3 + $0x150] sm:$0x1f] %vm386_vm0, %v253_v58  ;;  %430 = vst.msk [vmem:[%s2315_s3 + $0x158] sm:$0x1f] %vm386_vm0, %v254_v59 }
  0xfa   :  { %v1159_v12 = vld [vmem:[%s2314_s2 + $0x240] sm:$0x1f]  ;;  %v1164_v13 = vld [vmem:[%s2314_s2 + $0x248] sm:$0x1f]  ;;  %v1169_v14 = vld [vmem:[%s2314_s2 + $0x250] sm:$0x1f] }
  0xfb   :  { %v1174_v15 = vld [vmem:[%s2314_s2 + $0x258] sm:$0x1f]  ;;  %v283_v57 = vadd.f32 %v1159_v12, %v634_v26  ;;  %v284_v58 = vadd.f32 %v1164_v13, %v634_v26  ;;  %v285_v59 = vadd.f32 %v1169_v14, %v634_v26 }
  0xfc   :  { %431 = vst.msk [vmem:[%s2315_s3 + $0x160] sm:$0x1f] %vm386_vm0, %v255_v0  ;;  %432 = vst.msk [vmem:[%s2315_s3 + $0x168] sm:$0x1f] %vm386_vm0, %v256_v1  ;;  %v286_v60 = vadd.f32 %v1174_v15, %v634_v26 }
  0xfd   :  { %433 = vst.msk [vmem:[%s2315_s3 + $0x170] sm:$0x1f] %vm386_vm0, %v257_v2  ;;  %434 = vst.msk [vmem:[%s2315_s3 + $0x178] sm:$0x1f] %vm386_vm0, %v258_v3 }
 0x104   :  { %v1203_v20 = vld [vmem:[%s2314_s2 + $0x260] sm:$0x1f]  ;;  %v1208_v21 = vld [vmem:[%s2314_s2 + $0x268] sm:$0x1f]  ;;  %v1213_v22 = vld [vmem:[%s2314_s2 + $0x270] sm:$0x1f] }
 0x105   :  { %v1218_v23 = vld [vmem:[%s2314_s2 + $0x278] sm:$0x1f]  ;;  %v287_v1 = vadd.f32 %v1203_v20, %v634_v26  ;;  %v288_v2 = vadd.f32 %v1208_v21, %v634_v26  ;;  %v289_v3 = vadd.f32 %v1213_v22, %v634_v26 }
 0x106   :  { %435 = vst.msk [vmem:[%s2315_s3 + $0x180] sm:$0x1f] %vm386_vm0, %v259_v8  ;;  %436 = vst.msk [vmem:[%s2315_s3 + $0x188] sm:$0x1f] %vm386_vm0, %v260_v9  ;;  %v290_v4 = vadd.f32 %v1218_v23, %v634_v26 }
 0x107   :  { %437 = vst.msk [vmem:[%s2315_s3 + $0x190] sm:$0x1f] %vm386_vm0, %v261_v10  ;;  %438 = vst.msk [vmem:[%s2315_s3 + $0x198] sm:$0x1f] %vm386_vm0, %v262_v11 }
 0x10e   :  { %v1247_v29 = vld [vmem:[%s2314_s2 + $0x280] sm:$0x1f]  ;;  %v1252_v30 = vld [vmem:[%s2314_s2 + $0x288] sm:$0x1f]  ;;  %v1257_v31 = vld [vmem:[%s2314_s2 + $0x290] sm:$0x1f] }
 0x10f   :  { %v1262_v32 = vld [vmem:[%s2314_s2 + $0x298] sm:$0x1f]  ;;  %v291_v9 = vadd.f32 %v1247_v29, %v634_v26  ;;  %v292_v10 = vadd.f32 %v1252_v30, %v634_v26  ;;  %v293_v11 = vadd.f32 %v1257_v31, %v634_v26 }
 0x110   :  { %439 = vst.msk [vmem:[%s2315_s3 + $0x1a0] sm:$0x1f] %vm386_vm0, %v263_v16  ;;  %440 = vst.msk [vmem:[%s2315_s3 + $0x1a8] sm:$0x1f] %vm386_vm0, %v264_v17  ;;  %v294_v12 = vadd.f32 %v1262_v32, %v634_v26 }
 0x111   :  { %441 = vst.msk [vmem:[%s2315_s3 + $0x1b0] sm:$0x1f] %vm386_vm0, %v265_v18  ;;  %442 = vst.msk [vmem:[%s2315_s3 + $0x1b8] sm:$0x1f] %vm386_vm0, %v266_v19 }
 0x118   :  { %v1291_v37 = vld [vmem:[%s2314_s2 + $0x2a0] sm:$0x1f]  ;;  %v1296_v38 = vld [vmem:[%s2314_s2 + $0x2a8] sm:$0x1f]  ;;  %v1301_v39 = vld [vmem:[%s2314_s2 + $0x2b0] sm:$0x1f] }
 0x119   :  { %v1306_v40 = vld [vmem:[%s2314_s2 + $0x2b8] sm:$0x1f]  ;;  %v295_v17 = vadd.f32 %v1291_v37, %v634_v26  ;;  %v296_v18 = vadd.f32 %v1296_v38, %v634_v26  ;;  %v297_v19 = vadd.f32 %v1301_v39, %v634_v26 }
 0x11a   :  { %443 = vst.msk [vmem:[%s2315_s3 + $0x1c0] sm:$0x1f] %vm386_vm0, %v267_v24  ;;  %444 = vst.msk [vmem:[%s2315_s3 + $0x1c8] sm:$0x1f] %vm386_vm0, %v268_v25  ;;  %v298_v20 = vadd.f32 %v1306_v40, %v634_v26 }
 0x11b   :  { %445 = vst.msk [vmem:[%s2315_s3 + $0x1d0] sm:$0x1f] %vm386_vm0, %v269_v27  ;;  %446 = vst.msk [vmem:[%s2315_s3 + $0x1d8] sm:$0x1f] %vm386_vm0, %v270_v28 }
 0x122   :  { %v1335_v45 = vld [vmem:[%s2314_s2 + $0x2c0] sm:$0x1f]  ;;  %v1340_v46 = vld [vmem:[%s2314_s2 + $0x2c8] sm:$0x1f]  ;;  %v1345_v47 = vld [vmem:[%s2314_s2 + $0x2d0] sm:$0x1f] }
 0x123   :  { %v1350_v48 = vld [vmem:[%s2314_s2 + $0x2d8] sm:$0x1f]  ;;  %v299_v25 = vadd.f32 %v1335_v45, %v634_v26  ;;  %v300_v27 = vadd.f32 %v1340_v46, %v634_v26  ;;  %v301_v28 = vadd.f32 %v1345_v47, %v634_v26 }
 0x124   :  { %447 = vst.msk [vmem:[%s2315_s3 + $0x1e0] sm:$0x1f] %vm386_vm0, %v271_v33  ;;  %448 = vst.msk [vmem:[%s2315_s3 + $0x1e8] sm:$0x1f] %vm386_vm0, %v272_v34  ;;  %v302_v29 = vadd.f32 %v1350_v48, %v634_v26 }
 0x125   :  { %449 = vst.msk [vmem:[%s2315_s3 + $0x1f0] sm:$0x1f] %vm386_vm0, %v273_v35  ;;  %450 = vst.msk [vmem:[%s2315_s3 + $0x1f8] sm:$0x1f] %vm386_vm0, %v274_v36 }
 0x12c   :  { %v1379_v53 = vld [vmem:[%s2314_s2 + $0x2e0] sm:$0x1f]  ;;  %v1384_v54 = vld [vmem:[%s2314_s2 + $0x2e8] sm:$0x1f]  ;;  %v1389_v55 = vld [vmem:[%s2314_s2 + $0x2f0] sm:$0x1f] }
 0x12d   :  { %v1394_v56 = vld [vmem:[%s2314_s2 + $0x2f8] sm:$0x1f]  ;;  %v303_v34 = vadd.f32 %v1379_v53, %v634_v26  ;;  %v304_v35 = vadd.f32 %v1384_v54, %v634_v26  ;;  %v305_v36 = vadd.f32 %v1389_v55, %v634_v26 }
 0x12e   :  { %451 = vst.msk [vmem:[%s2315_s3 + $0x200] sm:$0x1f] %vm386_vm0, %v275_v41  ;;  %452 = vst.msk [vmem:[%s2315_s3 + $0x208] sm:$0x1f] %vm386_vm0, %v276_v42  ;;  %v306_v37 = vadd.f32 %v1394_v56, %v634_v26 }
 0x12f   :  { %453 = vst.msk [vmem:[%s2315_s3 + $0x210] sm:$0x1f] %vm386_vm0, %v277_v43  ;;  %454 = vst.msk [vmem:[%s2315_s3 + $0x218] sm:$0x1f] %vm386_vm0, %v278_v44 }
 0x136   :  { %v1423_v61 = vld [vmem:[%s2314_s2 + $0x300] sm:$0x1f]  ;;  %v1428_v62 = vld [vmem:[%s2314_s2 + $0x308] sm:$0x1f]  ;;  %v1433_v63 = vld [vmem:[%s2314_s2 + $0x310] sm:$0x1f] }
 0x137   :  { %v1438_v0 = vld [vmem:[%s2314_s2 + $0x318] sm:$0x1f]  ;;  %v307_v42 = vadd.f32 %v1423_v61, %v634_v26  ;;  %v308_v43 = vadd.f32 %v1428_v62, %v634_v26  ;;  %v309_v44 = vadd.f32 %v1433_v63, %v634_v26 }
 0x138   :  { %455 = vst.msk [vmem:[%s2315_s3 + $0x220] sm:$0x1f] %vm386_vm0, %v279_v49  ;;  %456 = vst.msk [vmem:[%s2315_s3 + $0x228] sm:$0x1f] %vm386_vm0, %v280_v50  ;;  %v310_v45 = vadd.f32 %v1438_v0, %v634_v26 }
 0x139   :  { %457 = vst.msk [vmem:[%s2315_s3 + $0x230] sm:$0x1f] %vm386_vm0, %v281_v51  ;;  %458 = vst.msk [vmem:[%s2315_s3 + $0x238] sm:$0x1f] %vm386_vm0, %v282_v52 }
 0x140   :  { %v1467_v5 = vld [vmem:[%s2314_s2 + $0x320] sm:$0x1f]  ;;  %v1472_v6 = vld [vmem:[%s2314_s2 + $0x328] sm:$0x1f]  ;;  %v1477_v7 = vld [vmem:[%s2314_s2 + $0x330] sm:$0x1f] }
 0x141   :  { %v1482_v8 = vld [vmem:[%s2314_s2 + $0x338] sm:$0x1f]  ;;  %v311_v50 = vadd.f32 %v1467_v5, %v634_v26  ;;  %v312_v51 = vadd.f32 %v1472_v6, %v634_v26  ;;  %v313_v52 = vadd.f32 %v1477_v7, %v634_v26 }
 0x142   :  { %459 = vst.msk [vmem:[%s2315_s3 + $0x240] sm:$0x1f] %vm386_vm0, %v283_v57  ;;  %460 = vst.msk [vmem:[%s2315_s3 + $0x248] sm:$0x1f] %vm386_vm0, %v284_v58  ;;  %v314_v53 = vadd.f32 %v1482_v8, %v634_v26 }
 0x143   :  { %461 = vst.msk [vmem:[%s2315_s3 + $0x250] sm:$0x1f] %vm386_vm0, %v285_v59  ;;  %462 = vst.msk [vmem:[%s2315_s3 + $0x258] sm:$0x1f] %vm386_vm0, %v286_v60 }
 0x14a   :  { %v1511_v13 = vld [vmem:[%s2314_s2 + $0x340] sm:$0x1f]  ;;  %v1516_v14 = vld [vmem:[%s2314_s2 + $0x348] sm:$0x1f]  ;;  %v1521_v15 = vld [vmem:[%s2314_s2 + $0x350] sm:$0x1f] }
 0x14b   :  { %v1526_v16 = vld [vmem:[%s2314_s2 + $0x358] sm:$0x1f]  ;;  %v315_v58 = vadd.f32 %v1511_v13, %v634_v26  ;;  %v316_v59 = vadd.f32 %v1516_v14, %v634_v26  ;;  %v317_v60 = vadd.f32 %v1521_v15, %v634_v26 }
 0x14c   :  { %463 = vst.msk [vmem:[%s2315_s3 + $0x260] sm:$0x1f] %vm386_vm0, %v287_v1  ;;  %464 = vst.msk [vmem:[%s2315_s3 + $0x268] sm:$0x1f] %vm386_vm0, %v288_v2  ;;  %v318_v61 = vadd.f32 %v1526_v16, %v634_v26 }
 0x14d   :  { %465 = vst.msk [vmem:[%s2315_s3 + $0x270] sm:$0x1f] %vm386_vm0, %v289_v3  ;;  %466 = vst.msk [vmem:[%s2315_s3 + $0x278] sm:$0x1f] %vm386_vm0, %v290_v4 }
 0x154   :  { %v1555_v21 = vld [vmem:[%s2314_s2 + $0x360] sm:$0x1f]  ;;  %v1560_v22 = vld [vmem:[%s2314_s2 + $0x368] sm:$0x1f]  ;;  %v1565_v23 = vld [vmem:[%s2314_s2 + $0x370] sm:$0x1f] }
 0x155   :  { %v1570_v24 = vld [vmem:[%s2314_s2 + $0x378] sm:$0x1f]  ;;  %v319_v2 = vadd.f32 %v1555_v21, %v634_v26  ;;  %v320_v3 = vadd.f32 %v1560_v22, %v634_v26  ;;  %v321_v4 = vadd.f32 %v1565_v23, %v634_v26 }
 0x156   :  { %467 = vst.msk [vmem:[%s2315_s3 + $0x280] sm:$0x1f] %vm386_vm0, %v291_v9  ;;  %468 = vst.msk [vmem:[%s2315_s3 + $0x288] sm:$0x1f] %vm386_vm0, %v292_v10  ;;  %v322_v5 = vadd.f32 %v1570_v24, %v634_v26 }
 0x157   :  { %469 = vst.msk [vmem:[%s2315_s3 + $0x290] sm:$0x1f] %vm386_vm0, %v293_v11  ;;  %470 = vst.msk [vmem:[%s2315_s3 + $0x298] sm:$0x1f] %vm386_vm0, %v294_v12 }
 0x15e   :  { %v1599_v30 = vld [vmem:[%s2314_s2 + $0x380] sm:$0x1f]  ;;  %v1604_v31 = vld [vmem:[%s2314_s2 + $0x388] sm:$0x1f]  ;;  %v1609_v32 = vld [vmem:[%s2314_s2 + $0x390] sm:$0x1f] }
 0x15f   :  { %v1614_v33 = vld [vmem:[%s2314_s2 + $0x398] sm:$0x1f]  ;;  %v323_v10 = vadd.f32 %v1599_v30, %v634_v26  ;;  %v324_v11 = vadd.f32 %v1604_v31, %v634_v26  ;;  %v325_v12 = vadd.f32 %v1609_v32, %v634_v26 }
 0x160   :  { %471 = vst.msk [vmem:[%s2315_s3 + $0x2a0] sm:$0x1f] %vm386_vm0, %v295_v17  ;;  %472 = vst.msk [vmem:[%s2315_s3 + $0x2a8] sm:$0x1f] %vm386_vm0, %v296_v18  ;;  %v326_v13 = vadd.f32 %v1614_v33, %v634_v26 }
 0x161   :  { %473 = vst.msk [vmem:[%s2315_s3 + $0x2b0] sm:$0x1f] %vm386_vm0, %v297_v19  ;;  %474 = vst.msk [vmem:[%s2315_s3 + $0x2b8] sm:$0x1f] %vm386_vm0, %v298_v20 }
 0x168   :  { %v1643_v38 = vld [vmem:[%s2314_s2 + $0x3a0] sm:$0x1f]  ;;  %v1648_v39 = vld [vmem:[%s2314_s2 + $0x3a8] sm:$0x1f]  ;;  %v1653_v40 = vld [vmem:[%s2314_s2 + $0x3b0] sm:$0x1f] }
 0x169   :  { %v1658_v41 = vld [vmem:[%s2314_s2 + $0x3b8] sm:$0x1f]  ;;  %v327_v18 = vadd.f32 %v1643_v38, %v634_v26  ;;  %v328_v19 = vadd.f32 %v1648_v39, %v634_v26  ;;  %v329_v20 = vadd.f32 %v1653_v40, %v634_v26 }
 0x16a   :  { %475 = vst.msk [vmem:[%s2315_s3 + $0x2c0] sm:$0x1f] %vm386_vm0, %v299_v25  ;;  %476 = vst.msk [vmem:[%s2315_s3 + $0x2c8] sm:$0x1f] %vm386_vm0, %v300_v27  ;;  %v330_v21 = vadd.f32 %v1658_v41, %v634_v26 }
 0x16b   :  { %477 = vst.msk [vmem:[%s2315_s3 + $0x2d0] sm:$0x1f] %vm386_vm0, %v301_v28  ;;  %478 = vst.msk [vmem:[%s2315_s3 + $0x2d8] sm:$0x1f] %vm386_vm0, %v302_v29 }
 0x172   :  { %v1687_v46 = vld [vmem:[%s2314_s2 + $0x3c0] sm:$0x1f]  ;;  %v1692_v47 = vld [vmem:[%s2314_s2 + $0x3c8] sm:$0x1f]  ;;  %v1697_v48 = vld [vmem:[%s2314_s2 + $0x3d0] sm:$0x1f] }
 0x173   :  { %v1702_v49 = vld [vmem:[%s2314_s2 + $0x3d8] sm:$0x1f]  ;;  %v331_v27 = vadd.f32 %v1687_v46, %v634_v26  ;;  %v332_v28 = vadd.f32 %v1692_v47, %v634_v26  ;;  %v333_v29 = vadd.f32 %v1697_v48, %v634_v26 }
 0x174   :  { %479 = vst.msk [vmem:[%s2315_s3 + $0x2e0] sm:$0x1f] %vm386_vm0, %v303_v34  ;;  %480 = vst.msk [vmem:[%s2315_s3 + $0x2e8] sm:$0x1f] %vm386_vm0, %v304_v35  ;;  %v334_v30 = vadd.f32 %v1702_v49, %v634_v26 }
 0x175   :  { %481 = vst.msk [vmem:[%s2315_s3 + $0x2f0] sm:$0x1f] %vm386_vm0, %v305_v36  ;;  %482 = vst.msk [vmem:[%s2315_s3 + $0x2f8] sm:$0x1f] %vm386_vm0, %v306_v37 }
 0x17c   :  { %v1731_v54 = vld [vmem:[%s2314_s2 + $0x3e0] sm:$0x1f]  ;;  %v1736_v55 = vld [vmem:[%s2314_s2 + $0x3e8] sm:$0x1f]  ;;  %v1741_v56 = vld [vmem:[%s2314_s2 + $0x3f0] sm:$0x1f] }
 0x17d   :  { %v1746_v57 = vld [vmem:[%s2314_s2 + $0x3f8] sm:$0x1f]  ;;  %v335_v35 = vadd.f32 %v1731_v54, %v634_v26  ;;  %v336_v36 = vadd.f32 %v1736_v55, %v634_v26  ;;  %v337_v37 = vadd.f32 %v1741_v56, %v634_v26 }
 0x17e   :  { %483 = vst.msk [vmem:[%s2315_s3 + $0x300] sm:$0x1f] %vm386_vm0, %v307_v42  ;;  %484 = vst.msk [vmem:[%s2315_s3 + $0x308] sm:$0x1f] %vm386_vm0, %v308_v43  ;;  %v338_v38 = vadd.f32 %v1746_v57, %v634_v26 }
 0x17f   :  { %485 = vst.msk [vmem:[%s2315_s3 + $0x310] sm:$0x1f] %vm386_vm0, %v309_v44  ;;  %486 = vst.msk [vmem:[%s2315_s3 + $0x318] sm:$0x1f] %vm386_vm0, %v310_v45 }
 0x186   :  { %v1775_v62 = vld [vmem:[%s2314_s2 + $0x400] sm:$0x1f]  ;;  %v1780_v63 = vld [vmem:[%s2314_s2 + $0x408] sm:$0x1f]  ;;  %v1785_v0 = vld [vmem:[%s2314_s2 + $0x410] sm:$0x1f] }
 0x187   :  { %v1790_v1 = vld [vmem:[%s2314_s2 + $0x418] sm:$0x1f]  ;;  %v339_v42 = vadd.f32 %v1775_v62, %v634_v26  ;;  %v340_v43 = vadd.f32 %v1780_v63, %v634_v26  ;;  %v341_v44 = vadd.f32 %v1785_v0, %v634_v26 }
 0x188   :  { %487 = vst.msk [vmem:[%s2315_s3 + $0x320] sm:$0x1f] %vm386_vm0, %v311_v50  ;;  %488 = vst.msk [vmem:[%s2315_s3 + $0x328] sm:$0x1f] %vm386_vm0, %v312_v51  ;;  %v342_v45 = vadd.f32 %v1790_v1, %v634_v26 }
 0x189   :  { %489 = vst.msk [vmem:[%s2315_s3 + $0x330] sm:$0x1f] %vm386_vm0, %v313_v52  ;;  %490 = vst.msk [vmem:[%s2315_s3 + $0x338] sm:$0x1f] %vm386_vm0, %v314_v53 }
 0x190   :  { %v168_v6 = vld [vmem:[%s2314_s2 + $0x420] sm:$0x1f]  ;;  %v169_v7 = vld [vmem:[%s2314_s2 + $0x428] sm:$0x1f]  ;;  %v170_v8 = vld [vmem:[%s2314_s2 + $0x430] sm:$0x1f] }
 0x191   :  { %v171_v9 = vld [vmem:[%s2314_s2 + $0x438] sm:$0x1f]  ;;  %v343_v49 = vadd.f32 %v168_v6, %v634_v26  ;;  %v344_v50 = vadd.f32 %v169_v7, %v634_v26  ;;  %v345_v51 = vadd.f32 %v170_v8, %v634_v26 }
 0x192   :  { %491 = vst.msk [vmem:[%s2315_s3 + $0x340] sm:$0x1f] %vm386_vm0, %v315_v58  ;;  %492 = vst.msk [vmem:[%s2315_s3 + $0x348] sm:$0x1f] %vm386_vm0, %v316_v59  ;;  %v346_v52 = vadd.f32 %v171_v9, %v634_v26 }
 0x193   :  { %493 = vst.msk [vmem:[%s2315_s3 + $0x350] sm:$0x1f] %vm386_vm0, %v317_v60  ;;  %494 = vst.msk [vmem:[%s2315_s3 + $0x358] sm:$0x1f] %vm386_vm0, %v318_v61 }
 0x19a   :  { %v172_v14 = vld [vmem:[%s2314_s2 + $0x440] sm:$0x1f]  ;;  %v173_v15 = vld [vmem:[%s2314_s2 + $0x448] sm:$0x1f]  ;;  %v174_v16 = vld [vmem:[%s2314_s2 + $0x450] sm:$0x1f] }
 0x19b   :  { %v175_v17 = vld [vmem:[%s2314_s2 + $0x458] sm:$0x1f]  ;;  %v347_v56 = vadd.f32 %v172_v14, %v634_v26  ;;  %v348_v57 = vadd.f32 %v173_v15, %v634_v26  ;;  %v349_v58 = vadd.f32 %v174_v16, %v634_v26 }
 0x19c   :  { %495 = vst.msk [vmem:[%s2315_s3 + $0x360] sm:$0x1f] %vm386_vm0, %v319_v2  ;;  %496 = vst.msk [vmem:[%s2315_s3 + $0x368] sm:$0x1f] %vm386_vm0, %v320_v3  ;;  %v350_v59 = vadd.f32 %v175_v17, %v634_v26 }
 0x19d   :  { %497 = vst.msk [vmem:[%s2315_s3 + $0x370] sm:$0x1f] %vm386_vm0, %v321_v4  ;;  %498 = vst.msk [vmem:[%s2315_s3 + $0x378] sm:$0x1f] %vm386_vm0, %v322_v5 }
 0x1a4   :  { %v176_v22 = vld [vmem:[%s2314_s2 + $0x460] sm:$0x1f]  ;;  %v177_v23 = vld [vmem:[%s2314_s2 + $0x468] sm:$0x1f]  ;;  %v178_v24 = vld [vmem:[%s2314_s2 + $0x470] sm:$0x1f] }
 0x1a5   :  { %v179_v25 = vld [vmem:[%s2314_s2 + $0x478] sm:$0x1f]  ;;  %v351_v63 = vadd.f32 %v176_v22, %v634_v26  ;;  %v352_v0 = vadd.f32 %v177_v23, %v634_v26  ;;  %v353_v1 = vadd.f32 %v178_v24, %v634_v26 }
 0x1a6   :  { %499 = vst.msk [vmem:[%s2315_s3 + $0x380] sm:$0x1f] %vm386_vm0, %v323_v10  ;;  %500 = vst.msk [vmem:[%s2315_s3 + $0x388] sm:$0x1f] %vm386_vm0, %v324_v11  ;;  %v354_v2 = vadd.f32 %v179_v25, %v634_v26 }
 0x1a7   :  { %501 = vst.msk [vmem:[%s2315_s3 + $0x390] sm:$0x1f] %vm386_vm0, %v325_v12  ;;  %502 = vst.msk [vmem:[%s2315_s3 + $0x398] sm:$0x1f] %vm386_vm0, %v326_v13 }
 0x1ae   :  { %v180_v31 = vld [vmem:[%s2314_s2 + $0x480] sm:$0x1f]  ;;  %v181_v32 = vld [vmem:[%s2314_s2 + $0x488] sm:$0x1f]  ;;  %v182_v33 = vld [vmem:[%s2314_s2 + $0x490] sm:$0x1f] }
 0x1af   :  { %v183_v34 = vld [vmem:[%s2314_s2 + $0x498] sm:$0x1f]  ;;  %v355_v6 = vadd.f32 %v180_v31, %v634_v26  ;;  %v356_v7 = vadd.f32 %v181_v32, %v634_v26  ;;  %v357_v8 = vadd.f32 %v182_v33, %v634_v26 }
 0x1b0   :  { %503 = vst.msk [vmem:[%s2315_s3 + $0x3a0] sm:$0x1f] %vm386_vm0, %v327_v18  ;;  %504 = vst.msk [vmem:[%s2315_s3 + $0x3a8] sm:$0x1f] %vm386_vm0, %v328_v19  ;;  %v358_v9 = vadd.f32 %v183_v34, %v634_v26 }
 0x1b1   :  { %505 = vst.msk [vmem:[%s2315_s3 + $0x3b0] sm:$0x1f] %vm386_vm0, %v329_v20  ;;  %506 = vst.msk [vmem:[%s2315_s3 + $0x3b8] sm:$0x1f] %vm386_vm0, %v330_v21 }
 0x1b8   :  { %v184_v39 = vld [vmem:[%s2314_s2 + $0x4a0] sm:$0x1f]  ;;  %v185_v40 = vld [vmem:[%s2314_s2 + $0x4a8] sm:$0x1f]  ;;  %v186_v41 = vld [vmem:[%s2314_s2 + $0x4b0] sm:$0x1f] }
 0x1b9   :  { %507 = vst.msk [vmem:[%s2315_s3 + $0x3c0] sm:$0x1f] %vm386_vm0, %v331_v27  ;;  %508 = vst.msk [vmem:[%s2315_s3 + $0x3c8] sm:$0x1f] %vm386_vm0, %v332_v28  ;;  %v359_v13 = vadd.f32 %v184_v39, %v634_v26  ;;  %v360_v14 = vadd.f32 %v185_v40, %v634_v26  ;;  %v361_v15 = vadd.f32 %v186_v41, %v634_v26 }
 0x1ba   :  { %509 = vst.msk [vmem:[%s2315_s3 + $0x3d0] sm:$0x1f] %vm386_vm0, %v333_v29  ;;  %510 = vst.msk [vmem:[%s2315_s3 + $0x3d8] sm:$0x1f] %vm386_vm0, %v334_v30 }
 0x1c1   :  { %v187_v46 = vld [vmem:[%s2314_s2 + $0x4b8] sm:$0x1f]  ;;  %v188_v47 = vld [vmem:[%s2314_s2 + $0x4c0] sm:$0x1f]  ;;  %v189_v48 = vld [vmem:[%s2314_s2 + $0x4c8] sm:$0x1f] }
 0x1c2   :  { %511 = vst.msk [vmem:[%s2315_s3 + $0x3e0] sm:$0x1f] %vm386_vm0, %v335_v35  ;;  %512 = vst.msk [vmem:[%s2315_s3 + $0x3e8] sm:$0x1f] %vm386_vm0, %v336_v36  ;;  %v362_v16 = vadd.f32 %v187_v46, %v634_v26  ;;  %v363_v20 = vadd.f32 %v188_v47, %v634_v26  ;;  %v364_v21 = vadd.f32 %v189_v48, %v634_v26 }
 0x1c3   :  { %513 = vst.msk [vmem:[%s2315_s3 + $0x3f0] sm:$0x1f] %vm386_vm0, %v337_v37  ;;  %514 = vst.msk [vmem:[%s2315_s3 + $0x3f8] sm:$0x1f] %vm386_vm0, %v338_v38 }
 0x1ca   :  { %v190_v53 = vld [vmem:[%s2314_s2 + $0x4d0] sm:$0x1f]  ;;  %v191_v54 = vld [vmem:[%s2314_s2 + $0x4d8] sm:$0x1f]  ;;  %v192_v55 = vld [vmem:[%s2314_s2 + $0x4e0] sm:$0x1f] }
 0x1cb   :  { %515 = vst.msk [vmem:[%s2315_s3 + $0x400] sm:$0x1f] %vm386_vm0, %v339_v42  ;;  %516 = vst.msk [vmem:[%s2315_s3 + $0x408] sm:$0x1f] %vm386_vm0, %v340_v43  ;;  %v365_v22 = vadd.f32 %v190_v53, %v634_v26  ;;  %v366_v23 = vadd.f32 %v191_v54, %v634_v26  ;;  %v367_v28 = vadd.f32 %v192_v55, %v634_v26 }
 0x1cc   :  { %517 = vst.msk [vmem:[%s2315_s3 + $0x410] sm:$0x1f] %vm386_vm0, %v341_v44  ;;  %518 = vst.msk [vmem:[%s2315_s3 + $0x418] sm:$0x1f] %vm386_vm0, %v342_v45 }
 0x1d3   :  { %v193_v60 = vld [vmem:[%s2314_s2 + $0x4e8] sm:$0x1f]  ;;  %v194_v61 = vld [vmem:[%s2314_s2 + $0x4f0] sm:$0x1f]  ;;  %v195_v62 = vld [vmem:[%s2314_s2 + $0x4f8] sm:$0x1f] }
 0x1d4   :  { %519 = vst.msk [vmem:[%s2315_s3 + $0x420] sm:$0x1f] %vm386_vm0, %v343_v49  ;;  %520 = vst.msk [vmem:[%s2315_s3 + $0x428] sm:$0x1f] %vm386_vm0, %v344_v50  ;;  %v368_v29 = vadd.f32 %v193_v60, %v634_v26  ;;  %v369_v30 = vadd.f32 %v194_v61, %v634_v26  ;;  %v370_v31 = vadd.f32 %v195_v62, %v634_v26 }
 0x1d5   :  { %521 = vst.msk [vmem:[%s2315_s3 + $0x430] sm:$0x1f] %vm386_vm0, %v345_v51  ;;  %522 = vst.msk [vmem:[%s2315_s3 + $0x438] sm:$0x1f] %vm386_vm0, %v346_v52 }
 0x1dc   :  { %v196_v3 = vld [vmem:[%s2314_s2 + $0x500] sm:$0x1f]  ;;  %v197_v4 = vld [vmem:[%s2314_s2 + $0x508] sm:$0x1f]  ;;  %v198_v5 = vld [vmem:[%s2314_s2 + $0x510] sm:$0x1f] }
 0x1dd   :  { %523 = vst.msk [vmem:[%s2315_s3 + $0x440] sm:$0x1f] %vm386_vm0, %v347_v56  ;;  %524 = vst.msk [vmem:[%s2315_s3 + $0x448] sm:$0x1f] %vm386_vm0, %v348_v57  ;;  %v371_v35 = vadd.f32 %v196_v3, %v634_v26  ;;  %v372_v36 = vadd.f32 %v197_v4, %v634_v26  ;;  %v373_v37 = vadd.f32 %v198_v5, %v634_v26 }
 0x1de   :  { %525 = vst.msk [vmem:[%s2315_s3 + $0x450] sm:$0x1f] %vm386_vm0, %v349_v58  ;;  %526 = vst.msk [vmem:[%s2315_s3 + $0x458] sm:$0x1f] %vm386_vm0, %v350_v59 }
 0x1e5   :  { %v199_v10 = vld [vmem:[%s2314_s2 + $0x518] sm:$0x1f]  ;;  %v200_v11 = vld [vmem:[%s2314_s2 + $0x520] sm:$0x1f]  ;;  %v201_v12 = vld [vmem:[%s2314_s2 + $0x528] sm:$0x1f] }
 0x1e6   :  { %527 = vst.msk [vmem:[%s2315_s3 + $0x460] sm:$0x1f] %vm386_vm0, %v351_v63  ;;  %528 = vst.msk [vmem:[%s2315_s3 + $0x468] sm:$0x1f] %vm386_vm0, %v352_v0  ;;  %v374_v38 = vadd.f32 %v199_v10, %v634_v26  ;;  %v375_v39 = vadd.f32 %v200_v11, %v634_v26  ;;  %v376_v40 = vadd.f32 %v201_v12, %v634_v26 }
 0x1e7   :  { %529 = vst.msk [vmem:[%s2315_s3 + $0x470] sm:$0x1f] %vm386_vm0, %v353_v1  ;;  %530 = vst.msk [vmem:[%s2315_s3 + $0x478] sm:$0x1f] %vm386_vm0, %v354_v2 }
 0x1ee   :  { %v202_v17 = vld [vmem:[%s2314_s2 + $0x530] sm:$0x1f]  ;;  %v203_v18 = vld [vmem:[%s2314_s2 + $0x538] sm:$0x1f]  ;;  %v204_v19 = vld [vmem:[%s2314_s2 + $0x540] sm:$0x1f] }
 0x1ef   :  { %531 = vst.msk [vmem:[%s2315_s3 + $0x480] sm:$0x1f] %vm386_vm0, %v355_v6  ;;  %532 = vst.msk [vmem:[%s2315_s3 + $0x488] sm:$0x1f] %vm386_vm0, %v356_v7  ;;  %v377_v41 = vadd.f32 %v202_v17, %v634_v26  ;;  %v378_v42 = vadd.f32 %v203_v18, %v634_v26  ;;  %v379_v43 = vadd.f32 %v204_v19, %v634_v26 }
 0x1f0   :  { %533 = vst.msk [vmem:[%s2315_s3 + $0x490] sm:$0x1f] %vm386_vm0, %v357_v8  ;;  %534 = vst.msk [vmem:[%s2315_s3 + $0x498] sm:$0x1f] %vm386_vm0, %v358_v9 }
 0x1f7   :  { %v205_v24 = vld [vmem:[%s2314_s2 + $0x548] sm:$0x1f]  ;;  %v206_v25 = vld [vmem:[%s2314_s2 + $0x550] sm:$0x1f]  ;;  %v207_v27 = vld [vmem:[%s2314_s2 + $0x558] sm:$0x1f] }
 0x1f8   :  { %535 = vst.msk [vmem:[%s2315_s3 + $0x4a0] sm:$0x1f] %vm386_vm0, %v359_v13  ;;  %536 = vst.msk [vmem:[%s2315_s3 + $0x4a8] sm:$0x1f] %vm386_vm0, %v360_v14  ;;  %v380_v44 = vadd.f32 %v205_v24, %v634_v26  ;;  %v381_v45 = vadd.f32 %v206_v25, %v634_v26  ;;  %v382_v46 = vadd.f32 %v207_v27, %v634_v26 }
 0x1f9   :  { %537 = vst.msk [vmem:[%s2315_s3 + $0x4b0] sm:$0x1f] %vm386_vm0, %v361_v15  ;;  %538 = vst.msk [vmem:[%s2315_s3 + $0x4b8] sm:$0x1f] %vm386_vm0, %v362_v16 }
 0x200   :  { %v208_v32 = vld [vmem:[%s2314_s2 + $0x560] sm:$0x1f]  ;;  %v209_v33 = vld [vmem:[%s2314_s2 + $0x568] sm:$0x1f]  ;;  %v210_v34 = vld [vmem:[%s2314_s2 + $0x570] sm:$0x1f] }
 0x201   :  { %539 = vst.msk [vmem:[%s2315_s3 + $0x4c0] sm:$0x1f] %vm386_vm0, %v363_v20  ;;  %540 = vst.msk [vmem:[%s2315_s3 + $0x4c8] sm:$0x1f] %vm386_vm0, %v364_v21  ;;  %v383_v47 = vadd.f32 %v208_v32, %v634_v26  ;;  %v384_v48 = vadd.f32 %v209_v33, %v634_v26  ;;  %v385_v49 = vadd.f32 %v210_v34, %v634_v26 }
 0x202   :  { %541 = vst.msk [vmem:[%s2315_s3 + $0x4d0] sm:$0x1f] %vm386_vm0, %v365_v22  ;;  %542 = vst.msk [vmem:[%s2315_s3 + $0x4d8] sm:$0x1f] %vm386_vm0, %v366_v23 }
 0x203   :  { %543 = vst.msk [vmem:[%s2315_s3 + $0x4e0] sm:$0x1f] %vm386_vm0, %v367_v28  ;;  %544 = vst.msk [vmem:[%s2315_s3 + $0x4e8] sm:$0x1f] %vm386_vm0, %v368_v29 }
 0x204   :  { %545 = vst.msk [vmem:[%s2315_s3 + $0x4f0] sm:$0x1f] %vm386_vm0, %v369_v30  ;;  %546 = vst.msk [vmem:[%s2315_s3 + $0x4f8] sm:$0x1f] %vm386_vm0, %v370_v31 }
 0x205   :  { %547 = vst.msk [vmem:[%s2315_s3 + $0x500] sm:$0x1f] %vm386_vm0, %v371_v35  ;;  %548 = vst.msk [vmem:[%s2315_s3 + $0x508] sm:$0x1f] %vm386_vm0, %v372_v36 }
 0x206   :  { %549 = vst.msk [vmem:[%s2315_s3 + $0x510] sm:$0x1f] %vm386_vm0, %v373_v37  ;;  %550 = vst.msk [vmem:[%s2315_s3 + $0x518] sm:$0x1f] %vm386_vm0, %v374_v38 }
 0x207   :  { %551 = vst.msk [vmem:[%s2315_s3 + $0x520] sm:$0x1f] %vm386_vm0, %v375_v39  ;;  %552 = vst.msk [vmem:[%s2315_s3 + $0x528] sm:$0x1f] %vm386_vm0, %v376_v40 }
 0x208   :  { %553 = vst.msk [vmem:[%s2315_s3 + $0x530] sm:$0x1f] %vm386_vm0, %v377_v41  ;;  %554 = vst.msk [vmem:[%s2315_s3 + $0x538] sm:$0x1f] %vm386_vm0, %v378_v42 }
 0x209   :  { %555 = vst.msk [vmem:[%s2315_s3 + $0x540] sm:$0x1f] %vm386_vm0, %v379_v43  ;;  %556 = vst.msk [vmem:[%s2315_s3 + $0x548] sm:$0x1f] %vm386_vm0, %v380_v44 }
 0x20a   :  { %557 = vst.msk [vmem:[%s2315_s3 + $0x550] sm:$0x1f] %vm386_vm0, %v381_v45  ;;  %558 = vst.msk [vmem:[%s2315_s3 + $0x558] sm:$0x1f] %vm386_vm0, %v382_v46 }
 0x20b   :  { %559 = vst.msk [vmem:[%s2315_s3 + $0x560] sm:$0x1f] %vm386_vm0, %v383_v47  ;;  %560 = vst.msk [vmem:[%s2315_s3 + $0x568] sm:$0x1f] %vm386_vm0, %v384_v48 }
 0x20c   :  { %561 = vst.msk [vmem:[%s2315_s3 + $0x570] sm:$0x1f] %vm386_vm0, %v385_v49 }

</bundles_post_ra>
